<compile_context>
chip_gen: v6e
topology: v6e:2x2x1
jax: 0.10.0
libtpu: 0.0.40
codegen_flags: <defaults>
</compile_context>

<pallas_src>
import functools

import jax
import jax.numpy as jnp
import numpy as np
from jax.experimental import pallas as pl
from jax.experimental.pallas import tpu as pltpu


# ----------------------------- Pallas kernel --------------------------------
def _corr_fc_relu_max_kernel(corr_ref, base_ref, wk_ref, wb_ref, b_ref, out_ref):
    """Fused grouped 1x1-conv + bias + ReLU + max over nsamples.

    corr_ref: (1, K, Ck, TN) f32   k-dependent features [S2_grp ; P2_grp]
    base_ref: (1, Cb, TN)    f32   k-invariant features [X1 ; P1]
    wk_ref:   (Cout, Ck)     f32   weights for the k-dependent part
    wb_ref:   (Cout, Cb)     f32   weights for the k-invariant part (P1 cols negated)
    b_ref:    (Cout, 1)      f32   bias
    out_ref:  (1, Cout, TN)  f32
    """
    nsamples = corr_ref.shape[1]
    wk = wk_ref[...]

    # k-invariant contribution, computed once per tile.
    base = jnp.dot(wb_ref[...], base_ref[0],
                   preferred_element_type=jnp.float32) + b_ref[...]

    # Running max of the k-dependent contribution; K is small -> unrolled.
    acc = jnp.dot(wk, corr_ref[0, 0], preferred_element_type=jnp.float32)
    for k in range(1, nsamples):
        acc = jnp.maximum(
            acc, jnp.dot(wk, corr_ref[0, k], preferred_element_type=jnp.float32))

    # max/ReLU are monotone and base is k-invariant -> add + ReLU once.
    out_ref[0] = jnp.maximum(acc + base, 0.0).astype(out_ref.dtype)


def _round_up(x, m):
    return (x + m - 1) // m * m


def _choose_tiling(batch, n_points, tile_n):
    """Pick a lane-tile (multiple of 128) and the padded point count."""
    n128 = _round_up(max(n_points, 1), 128)
    tn = _round_up(min(tile_n, n128), 128)
    # v7x: keep >= 2 grid steps so both TensorCores get work (no-op elsewhere).
    while batch * ((n128 + tn - 1) // tn) < 2 and tn > 128:
        tn = _round_up(tn // 2, 128)
    n_pad = _round_up(n128, tn)
    return tn, n_pad


def fused_corr_fc_relu_maxpool(corr, base, w_k, w_base, bias, *, tile_n):
    """corr: (B,K,Ck,Np) f32; base: (B,Cb,Np) f32 -> (B,Cout,Np) f32."""
    B, K, Ck, Np = corr.shape
    Cb = base.shape[1]
    Cout = w_k.shape[0]
    assert Np % tile_n == 0 and tile_n % 128 == 0

    grid = (B, Np // tile_n)
    flops = int(2 * B * Np * (K * Cout * Ck + Cout * Cb))
    bytes_accessed = int(corr.size * corr.dtype.itemsize
                         + base.size * base.dtype.itemsize
                         + (w_k.size + w_base.size + bias.size) * 4
                         + B * Cout * Np * 4)

    return pl.pallas_call(
        _corr_fc_relu_max_kernel,
        out_shape=jax.ShapeDtypeStruct((B, Cout, Np), jnp.float32),
        grid=grid,
        in_specs=[
            pl.BlockSpec((1, K, Ck, tile_n), lambda bi, ni: (bi, 0, 0, ni)),
            pl.BlockSpec((1, Cb, tile_n), lambda bi, ni: (bi, 0, ni)),
            pl.BlockSpec((Cout, Ck), lambda bi, ni: (0, 0)),
            pl.BlockSpec((Cout, Cb), lambda bi, ni: (0, 0)),
            pl.BlockSpec((Cout, 1), lambda bi, ni: (0, 0)),
        ],
        out_specs=pl.BlockSpec((1, Cout, tile_n), lambda bi, ni: (bi, 0, ni)),
        compiler_params=pltpu.CompilerParams(
            dimension_semantics=("parallel", "parallel")),
        cost_estimate=pl.CostEstimate(
            flops=flops, transcendentals=0, bytes_accessed=bytes_accessed),
    )(corr, base, w_k, w_base, bias)


# ------------------------------- JAX glue ------------------------------------
def query_ball_point_adaptive(radius, nsamples, xyz, new_xyz):
    """xyz: (B,M,3) support points (P2); new_xyz: (B,N,3) query points (P1).

    # TODO(synk): the exact reference implementation of query_ball_point_adaptive
    # was not provided; implemented as k-nearest-neighbour selection with the
    # per-query radius adapted to max(radius, k-th neighbour distance).
    """
    sqd = jnp.sum((new_xyz[:, :, None, :] - xyz[:, None, :, :]) ** 2, axis=-1)
    neg_vals, idx = jax.lax.top_k(-sqd, nsamples)                    # (B,N,K)
    kth = jnp.sqrt(jnp.maximum(-neg_vals[..., -1], 0.0))
    r = jnp.maximum(radius, kth)
    return idx, r


def _split_weights(W, in_channels, out_channels):
    """W: (Cout, Cout+Cin+3), columns ordered [S2 | X1 | disp] (module concat
    order).  Returns (W_k, W_base) for the displacement-folded formulation."""
    Cout, Cin = out_channels, in_channels
    w_s2 = W[:, :Cout]
    w_x1 = W[:, Cout:Cout + Cin]
    w_d = W[:, Cout + Cin:]
    w_k = jnp.concatenate([w_s2, w_d], axis=1)            # (Cout, Cout+3)
    if Cin != 0:
        w_base = jnp.concatenate([w_x1, -w_d], axis=1)    # (Cout, Cin+3)
    else:
        w_base = -w_d                                      # (Cout, 3)
    return w_k, w_base


def point_st_correlation(P1, P2, X1, S2, W, bias, *, radius, nsamples,
                         in_channels, tile_n=4096):
    """Forward of PointSpatioTemporalCorrelation.  Returns S1: (B, out_ch, N)."""
    B, N, _ = P1.shape
    Cout = W.shape[0]
    K = nsamples

    tn, n_pad = _choose_tiling(B, N, tile_n)
    pad = n_pad - N
    if pad:
        # Pad the *small* per-point inputs before gathering so the dominant
        # gathered tensor comes out lane-aligned (no extra HBM pad pass).
        # Padded support points get a huge coordinate so they are never picked
        # as neighbours of real queries (requires nsamples <= N, as in PyTorch).
        P1 = jnp.pad(P1, ((0, 0), (0, pad), (0, 0)))
        P2 = jnp.pad(P2, ((0, 0), (0, pad), (0, 0)), constant_values=1e6)
        X1 = jnp.pad(X1, ((0, 0), (0, 0), (0, pad)))
        S2 = jnp.pad(S2, ((0, 0), (0, 0), (0, pad)))

    idx, _r = query_ball_point_adaptive(radius, K, P2, P1)           # (B,Np,K)
    idx_t = jnp.transpose(idx, (0, 2, 1))                            # (B,K,Np)

    P1_t = jnp.transpose(P1, (0, 2, 1))                              # (B,3,Np)
    P2_t = jnp.transpose(P2, (0, 2, 1))                              # (B,3,Np)

    # Single gather for the k-dependent stream [S2 ; P2]: no concat of grouped
    # tensors, no displacement tensor, no K-fold X1 replication in HBM.
    src = jnp.concatenate([S2, P2_t], axis=1).astype(jnp.float32)    # (B,Cout+3,Np)
    corr = jnp.take_along_axis(src[:, None, :, :], idx_t[:, :, None, :],
                               axis=-1)                              # (B,K,Cout+3,Np)

    base = (jnp.concatenate([X1, P1_t], axis=1) if in_channels != 0
            else P1_t).astype(jnp.float32)                           # (B,Cin+3,Np)

    w_k, w_base = _split_weights(W.astype(jnp.float32), in_channels, Cout)
    b2 = bias.astype(jnp.float32).reshape(Cout, 1)

    out = fused_corr_fc_relu_maxpool(corr, base, w_k, w_base, b2, tile_n=tn)
    return out[:, :, :N]


def reference(P1, P2, X1, S2, W, bias, *, radius, nsamples, in_channels):
    """Pure-JAX f32 reference following the PyTorch module math literally."""
    B, N, _ = P1.shape
    idx, _r = query_ball_point_adaptive(radius, nsamples, P2, P1)    # (B,N,K)
    gather_idx = jnp.transpose(idx, (0, 2, 1))[:, :, None, :]        # (B,K,1,N)
    P1_t = jnp.transpose(P1, (0, 2, 1))
    P2_t = jnp.transpose(P2, (0, 2, 1))
    P2_grouped = jnp.take_along_axis(P2_t[:, None], gather_idx, axis=-1)  # (B,K,3,N)
    S2_grouped = jnp.take_along_axis(S2[:, None], gather_idx, axis=-1)    # (B,K,Co,N)
    displacement = P2_grouped - P1_t[:, None]
    if in_channels != 0:
        X1_rep = jnp.broadcast_to(X1[:, None], (B, nsamples) + X1.shape[1:])
        correlation = jnp.concatenate([S2_grouped, X1_rep, displacement], axis=2)
    else:
        correlation = jnp.concatenate([S2_grouped, displacement], axis=2)
    y = jnp.einsum("bkcn,oc->bkon", correlation, W) + bias[None, None, :, None]
    y = jnp.maximum(y, 0.0)
    return jnp.max(y, axis=1)                                        # (B,Cout,N)


# --------------------------------- main ---------------------------------------
if __name__ == "__main__":
    B, N, Cin, Cout, K = 2, 16, 4, 4, 8
    radius = 0.5
    C_total = Cin + Cout + 3

    key = jax.random.PRNGKey(0)
    k1, k2, k3, k4, k5, k6 = jax.random.split(key, 6)
    P1 = jax.random.uniform(k1, (B, N, 3), jnp.float32, -1.0, 1.0)
    P2 = jax.random.uniform(k2, (B, N, 3), jnp.float32, -1.0, 1.0)
    X1 = jax.random.normal(k3, (B, Cin, N), jnp.float32)
    S2 = jax.random.normal(k4, (B, Cout, N), jnp.float32)

    # Deterministic init of Conv2d(Cin+Cout+3, Cout, kernel_size=1, bias=True)
    bound = float(1.0 / np.sqrt(C_total))
    W = jax.random.uniform(k5, (Cout, C_total), jnp.float32, -bound, bound)
    b = jax.random.uniform(k6, (Cout,), jnp.float32, -bound, bound)

    fwd = jax.jit(functools.partial(
        point_st_correlation, radius=radius, nsamples=K, in_channels=Cin))
    S1 = jax.block_until_ready(fwd(P1, P2, X1, S2, W, b))
    assert S1.shape == (B, Cout, N), S1.shape

    S1_ref = reference(P1, P2, X1, S2, W, b, radius=radius, nsamples=K,
                       in_channels=Cin)
    # Full f32 path now (no bf16 quantization of the dominant stream): only
    # reassociation differences from folding the displacement into the bias.
    np.testing.assert_allclose(np.asarray(S1), np.asarray(S1_ref),
                               atol=1e-4, rtol=1e-4)

    print("KERNEL_OK")
</pallas_src>

<mosaic_0001>
module attributes {stable_mosaic.version = 11 : i64} {
  func.func @_corr_fc_relu_max_kernel(%arg0: i32, %arg1: i32, %arg2: memref<1x8x7x128xf32, #tpu.memory_space<vmem>>, %arg3: memref<1x7x128xf32, #tpu.memory_space<vmem>>, %arg4: memref<4x7xf32, #tpu.memory_space<vmem>>, %arg5: memref<4x7xf32, #tpu.memory_space<vmem>>, %arg6: memref<4x1xf32, #tpu.memory_space<vmem>>, %arg7: memref<1x4x128xf32, #tpu.memory_space<vmem>>) attributes {dimension_semantics = [#tpu.dimension_semantics<parallel>, #tpu.dimension_semantics<parallel>], iteration_bounds = array<i64: 2, 1>, scalar_prefetch = 0 : i64, scratch_operands = 0 : i64, tpu.core_type = #tpu.core_type<tc>, window_params = [{transform_indices = @transform_0, window_bounds = array<i64: 1, 8, 7, 128>}, {transform_indices = @transform_1, window_bounds = array<i64: 1, 7, 128>}, {pipeline_mode = #tpu.pipeline_mode<synchronous>, transform_indices = @transform_2, window_bounds = array<i64: 4, 7>}, {pipeline_mode = #tpu.pipeline_mode<synchronous>, transform_indices = @transform_3, window_bounds = array<i64: 4, 7>}, {pipeline_mode = #tpu.pipeline_mode<synchronous>, transform_indices = @transform_4, window_bounds = array<i64: 4, 1>}, {transform_indices = @transform_5, window_bounds = array<i64: 1, 4, 128>}]} {
    %c0 = arith.constant 0 : index
    %c0_0 = arith.constant 0 : index
    %0 = vector.load %arg4[%c0, %c0_0] : memref<4x7xf32, #tpu.memory_space<vmem>>, vector<4x7xf32>
    %c0_1 = arith.constant 0 : index
    %c0_2 = arith.constant 0 : index
    %1 = vector.load %arg5[%c0_1, %c0_2] : memref<4x7xf32, #tpu.memory_space<vmem>>, vector<4x7xf32>
    %c0_3 = arith.constant 0 : index
    %c0_4 = arith.constant 0 : index
    %c0_5 = arith.constant 0 : index
    %2 = vector.load %arg3[%c0_3, %c0_4, %c0_5] : memref<1x7x128xf32, #tpu.memory_space<vmem>>, vector<1x7x128xf32>
    %3 = vector.shape_cast %2 : vector<1x7x128xf32> to vector<7x128xf32>
    %cst = arith.constant dense<0.000000e+00> : vector<4x128xf32>
    %4 = tpu.matmul %1, %3, %cst {dimension_numbers = #tpu.dot_dimension_numbers<[1], [0], [0], [1], [0, 0, 1, 1], [], []>} : vector<4x7xf32>, vector<7x128xf32>, vector<4x128xf32> -> vector<4x128xf32>
    %c0_6 = arith.constant 0 : index
    %c0_7 = arith.constant 0 : index
    %5 = vector.load %arg6[%c0_6, %c0_7] : memref<4x1xf32, #tpu.memory_space<vmem>>, vector<4x1xf32>
    %6 = vector.broadcast %5 : vector<4x1xf32> to vector<4x128xf32>
    %7 = arith.addf %4, %6 : vector<4x128xf32>
    %c0_8 = arith.constant 0 : index
    %c0_9 = arith.constant 0 : index
    %c0_10 = arith.constant 0 : index
    %c0_11 = arith.constant 0 : index
    %8 = vector.load %arg2[%c0_8, %c0_9, %c0_10, %c0_11] : memref<1x8x7x128xf32, #tpu.memory_space<vmem>>, vector<1x1x7x128xf32>
    %9 = vector.shape_cast %8 : vector<1x1x7x128xf32> to vector<7x128xf32>
    %cst_12 = arith.constant dense<0.000000e+00> : vector<4x128xf32>
    %10 = tpu.matmul %0, %9, %cst_12 {dimension_numbers = #tpu.dot_dimension_numbers<[1], [0], [0], [1], [0, 0, 1, 1], [], []>} : vector<4x7xf32>, vector<7x128xf32>, vector<4x128xf32> -> vector<4x128xf32>
    %c0_13 = arith.constant 0 : index
    %c1 = arith.constant 1 : index
    %c0_14 = arith.constant 0 : index
    %c0_15 = arith.constant 0 : index
    %11 = vector.load %arg2[%c0_13, %c1, %c0_14, %c0_15] : memref<1x8x7x128xf32, #tpu.memory_space<vmem>>, vector<1x1x7x128xf32>
    %12 = vector.shape_cast %11 : vector<1x1x7x128xf32> to vector<7x128xf32>
    %cst_16 = arith.constant dense<0.000000e+00> : vector<4x128xf32>
    %13 = tpu.matmul %0, %12, %cst_16 {dimension_numbers = #tpu.dot_dimension_numbers<[1], [0], [0], [1], [0, 0, 1, 1], [], []>} : vector<4x7xf32>, vector<7x128xf32>, vector<4x128xf32> -> vector<4x128xf32>
    %14 = arith.maximumf %10, %13 : vector<4x128xf32>
    %c0_17 = arith.constant 0 : index
    %c2 = arith.constant 2 : index
    %c0_18 = arith.constant 0 : index
    %c0_19 = arith.constant 0 : index
    %15 = vector.load %arg2[%c0_17, %c2, %c0_18, %c0_19] : memref<1x8x7x128xf32, #tpu.memory_space<vmem>>, vector<1x1x7x128xf32>
    %16 = vector.shape_cast %15 : vector<1x1x7x128xf32> to vector<7x128xf32>
    %cst_20 = arith.constant dense<0.000000e+00> : vector<4x128xf32>
    %17 = tpu.matmul %0, %16, %cst_20 {dimension_numbers = #tpu.dot_dimension_numbers<[1], [0], [0], [1], [0, 0, 1, 1], [], []>} : vector<4x7xf32>, vector<7x128xf32>, vector<4x128xf32> -> vector<4x128xf32>
    %18 = arith.maximumf %14, %17 : vector<4x128xf32>
    %c0_21 = arith.constant 0 : index
    %c3 = arith.constant 3 : index
    %c0_22 = arith.constant 0 : index
    %c0_23 = arith.constant 0 : index
    %19 = vector.load %arg2[%c0_21, %c3, %c0_22, %c0_23] : memref<1x8x7x128xf32, #tpu.memory_space<vmem>>, vector<1x1x7x128xf32>
    %20 = vector.shape_cast %19 : vector<1x1x7x128xf32> to vector<7x128xf32>
    %cst_24 = arith.constant dense<0.000000e+00> : vector<4x128xf32>
    %21 = tpu.matmul %0, %20, %cst_24 {dimension_numbers = #tpu.dot_dimension_numbers<[1], [0], [0], [1], [0, 0, 1, 1], [], []>} : vector<4x7xf32>, vector<7x128xf32>, vector<4x128xf32> -> vector<4x128xf32>
    %22 = arith.maximumf %18, %21 : vector<4x128xf32>
    %c0_25 = arith.constant 0 : index
    %c4 = arith.constant 4 : index
    %c0_26 = arith.constant 0 : index
    %c0_27 = arith.constant 0 : index
    %23 = vector.load %arg2[%c0_25, %c4, %c0_26, %c0_27] : memref<1x8x7x128xf32, #tpu.memory_space<vmem>>, vector<1x1x7x128xf32>
    %24 = vector.shape_cast %23 : vector<1x1x7x128xf32> to vector<7x128xf32>
    %cst_28 = arith.constant dense<0.000000e+00> : vector<4x128xf32>
    %25 = tpu.matmul %0, %24, %cst_28 {dimension_numbers = #tpu.dot_dimension_numbers<[1], [0], [0], [1], [0, 0, 1, 1], [], []>} : vector<4x7xf32>, vector<7x128xf32>, vector<4x128xf32> -> vector<4x128xf32>
    %26 = arith.maximumf %22, %25 : vector<4x128xf32>
    %c0_29 = arith.constant 0 : index
    %c5 = arith.constant 5 : index
    %c0_30 = arith.constant 0 : index
    %c0_31 = arith.constant 0 : index
    %27 = vector.load %arg2[%c0_29, %c5, %c0_30, %c0_31] : memref<1x8x7x128xf32, #tpu.memory_space<vmem>>, vector<1x1x7x128xf32>
    %28 = vector.shape_cast %27 : vector<1x1x7x128xf32> to vector<7x128xf32>
    %cst_32 = arith.constant dense<0.000000e+00> : vector<4x128xf32>
    %29 = tpu.matmul %0, %28, %cst_32 {dimension_numbers = #tpu.dot_dimension_numbers<[1], [0], [0], [1], [0, 0, 1, 1], [], []>} : vector<4x7xf32>, vector<7x128xf32>, vector<4x128xf32> -> vector<4x128xf32>
    %30 = arith.maximumf %26, %29 : vector<4x128xf32>
    %c0_33 = arith.constant 0 : index
    %c6 = arith.constant 6 : index
    %c0_34 = arith.constant 0 : index
    %c0_35 = arith.constant 0 : index
    %31 = vector.load %arg2[%c0_33, %c6, %c0_34, %c0_35] : memref<1x8x7x128xf32, #tpu.memory_space<vmem>>, vector<1x1x7x128xf32>
    %32 = vector.shape_cast %31 : vector<1x1x7x128xf32> to vector<7x128xf32>
    %cst_36 = arith.constant dense<0.000000e+00> : vector<4x128xf32>
    %33 = tpu.matmul %0, %32, %cst_36 {dimension_numbers = #tpu.dot_dimension_numbers<[1], [0], [0], [1], [0, 0, 1, 1], [], []>} : vector<4x7xf32>, vector<7x128xf32>, vector<4x128xf32> -> vector<4x128xf32>
    %34 = arith.maximumf %30, %33 : vector<4x128xf32>
    %c0_37 = arith.constant 0 : index
    %c7 = arith.constant 7 : index
    %c0_38 = arith.constant 0 : index
    %c0_39 = arith.constant 0 : index
    %35 = vector.load %arg2[%c0_37, %c7, %c0_38, %c0_39] : memref<1x8x7x128xf32, #tpu.memory_space<vmem>>, vector<1x1x7x128xf32>
    %36 = vector.shape_cast %35 : vector<1x1x7x128xf32> to vector<7x128xf32>
    %cst_40 = arith.constant dense<0.000000e+00> : vector<4x128xf32>
    %37 = tpu.matmul %0, %36, %cst_40 {dimension_numbers = #tpu.dot_dimension_numbers<[1], [0], [0], [1], [0, 0, 1, 1], [], []>} : vector<4x7xf32>, vector<7x128xf32>, vector<4x128xf32> -> vector<4x128xf32>
    %38 = arith.maximumf %34, %37 : vector<4x128xf32>
    %39 = arith.addf %38, %7 : vector<4x128xf32>
    %cst_41 = arith.constant 0.000000e+00 : f32
    %40 = vector.broadcast %cst_41 : f32 to vector<4x128xf32>
    %41 = arith.maximumf %39, %40 : vector<4x128xf32>
    %c0_42 = arith.constant 0 : index
    %c0_43 = arith.constant 0 : index
    %c0_44 = arith.constant 0 : index
    %42 = vector.load %arg7[%c0_42, %c0_43, %c0_44] : memref<1x4x128xf32, #tpu.memory_space<vmem>>, vector<1x4x128xf32>
    %43 = vector.shape_cast %42 : vector<1x4x128xf32> to vector<4x128xf32>
    %44 = vector.shape_cast %41 : vector<4x128xf32> to vector<1x4x128xf32>
    tpu.vector_store %arg7[%c0_42, %c0_43, %c0_44], %44 {strides = array<i32>} : memref<1x4x128xf32, #tpu.memory_space<vmem>>, vector<1x4x128xf32>,
    return
  }
  func.func @transform_0(%arg0: i32, %arg1: i32) -> (i32, i32, i32, i32) {
    %c0_i32 = arith.constant 0 : i32
    %c0_i32_0 = arith.constant 0 : i32
    %c0_i32_1 = arith.constant 0 : i32
    return %arg0, %c0_i32, %c0_i32_0, %arg1 : i32, i32, i32, i32
  }
  func.func @transform_1(%arg0: i32, %arg1: i32) -> (i32, i32, i32) {
    %c0_i32 = arith.constant 0 : i32
    %c0_i32_0 = arith.constant 0 : i32
    return %arg0, %c0_i32, %arg1 : i32, i32, i32
  }
  func.func @transform_2(%arg0: i32, %arg1: i32) -> (i32, i32) {
    %c0_i32 = arith.constant 0 : i32
    %c0_i32_0 = arith.constant 0 : i32
    %c0_i32_1 = arith.constant 0 : i32
    return %c0_i32, %c0_i32_0 : i32, i32
  }
  func.func @transform_3(%arg0: i32, %arg1: i32) -> (i32, i32) {
    %c0_i32 = arith.constant 0 : i32
    %c0_i32_0 = arith.constant 0 : i32
    %c0_i32_1 = arith.constant 0 : i32
    return %c0_i32, %c0_i32_0 : i32, i32
  }
  func.func @transform_4(%arg0: i32, %arg1: i32) -> (i32, i32) {
    %c0_i32 = arith.constant 0 : i32
    %c0_i32_0 = arith.constant 0 : i32
    %c0_i32_1 = arith.constant 0 : i32
    return %c0_i32, %c0_i32_0 : i32, i32
  }
  func.func @transform_5(%arg0: i32, %arg1: i32) -> (i32, i32, i32) {
    %c0_i32 = arith.constant 0 : i32
    %c0_i32_0 = arith.constant 0 : i32
    return %arg0, %c0_i32, %arg1 : i32, i32, i32
  }
}

</mosaic_0001>

<bundles_post_ra>
// kernel: neg.2
= control target key start
LH: loop header
LB: loop body
LE: loop exit
PB: predicated region body
PF: predicated region fallthrough
CT: control target
= control target key end

     0   :  { %s520_s0 = inlined_call_operand.vmem [shape: f32[2,128,128], index: 0, kind: input, shape index: {}]   ;;  %s521_s1 = inlined_call_operand.vmem [shape: f32[2,128,128], index: 1, kind: output, shape index: {}]  }
   0x1   :  { %v2_v0 = vld [vmem:[%s520_s0] sm:$0xff]  ;;  %v258_v2 = vld [vmem:[%s520_s0 + $0x8] sm:$0xff]  ;;  %v262_v7 = vld [vmem:[%s520_s0 + $0x10] sm:$0xff] }
   0x2   :  { %v256_v1 = vld [vmem:[%s520_s0 + $0x80] sm:$0xff]  ;;  %v5_v3 = vxor.u32 2147483648, %v2_v0  ;;  %v20_v5 = vxor.u32 2147483648, %v258_v2  ;;  %v260_v6 = vld [vmem:[%s520_s0 + $0x88] sm:$0xff]  ;;  %v264_v8 = vld [vmem:[%s520_s0 + $0x90] sm:$0xff]  ;;  %v36_v10 = vxor.u32 2147483648, %v262_v7 }
   0x3   :  { %v12_v4 = vxor.u32 2147483648, %v256_v1  ;;  %v28_v9 = vxor.u32 2147483648, %v260_v6  ;;  %v44_v11 = vxor.u32 2147483648, %v264_v8  ;;  %v266_v12 = vld [vmem:[%s520_s0 + $0x18] sm:$0xff]  ;;  %v270_v14 = vld [vmem:[%s520_s0 + $0x20] sm:$0xff]  ;;  %v274_v19 = vld [vmem:[%s520_s0 + $0x28] sm:$0xff] }
   0x4   :  { %v268_v13 = vld [vmem:[%s520_s0 + $0x98] sm:$0xff]  ;;  %7 = vst [vmem:[%s521_s1] sm:$0xff] %v5_v3  ;;  %259 = vst [vmem:[%s521_s1 + $0x8] sm:$0xff] %v20_v5  ;;  %v52_v15 = vxor.u32 2147483648, %v266_v12  ;;  %v68_v17 = vxor.u32 2147483648, %v270_v14  ;;  %v272_v18 = vld [vmem:[%s520_s0 + $0xa0] sm:$0xff]  ;;  %v84_v22 = vxor.u32 2147483648, %v274_v19 }
   0x5   :  { %257 = vst [vmem:[%s521_s1 + $0x80] sm:$0xff] %v12_v4  ;;  %v60_v16 = vxor.u32 2147483648, %v268_v13  ;;  %v276_v20 = vld [vmem:[%s520_s0 + $0xa8] sm:$0xff]  ;;  %261 = vst [vmem:[%s521_s1 + $0x88] sm:$0xff] %v28_v9  ;;  %v76_v21 = vxor.u32 2147483648, %v272_v18  ;;  %v278_v24 = vld [vmem:[%s520_s0 + $0x30] sm:$0xff] }
   0x6   :  { %263 = vst [vmem:[%s521_s1 + $0x10] sm:$0xff] %v36_v10  ;;  %265 = vst [vmem:[%s521_s1 + $0x90] sm:$0xff] %v44_v11  ;;  %v92_v23 = vxor.u32 2147483648, %v276_v20  ;;  %v280_v25 = vld [vmem:[%s520_s0 + $0xb0] sm:$0xff]  ;;  %v282_v26 = vld [vmem:[%s520_s0 + $0x38] sm:$0xff]  ;;  %v100_v27 = vxor.u32 2147483648, %v278_v24 }
   0x7   :  { %267 = vst [vmem:[%s521_s1 + $0x18] sm:$0xff] %v52_v15  ;;  %269 = vst [vmem:[%s521_s1 + $0x98] sm:$0xff] %v60_v16  ;;  %v108_v28 = vxor.u32 2147483648, %v280_v25  ;;  %v116_v29 = vxor.u32 2147483648, %v282_v26  ;;  %v284_v30 = vld [vmem:[%s520_s0 + $0xb8] sm:$0xff]  ;;  %v286_v31 = vld [vmem:[%s520_s0 + $0x40] sm:$0xff] }
   0x8   :  { %271 = vst [vmem:[%s521_s1 + $0x20] sm:$0xff] %v68_v17  ;;  %v288_v32 = vld [vmem:[%s520_s0 + $0xc0] sm:$0xff]  ;;  %273 = vst [vmem:[%s521_s1 + $0xa0] sm:$0xff] %v76_v21  ;;  %v124_v33 = vxor.u32 2147483648, %v284_v30  ;;  %v132_v34 = vxor.u32 2147483648, %v286_v31  ;;  %v290_v36 = vld [vmem:[%s520_s0 + $0x48] sm:$0xff] }
   0x9   :  { %275 = vst [vmem:[%s521_s1 + $0x28] sm:$0xff] %v84_v22  ;;  %277 = vst [vmem:[%s521_s1 + $0xa8] sm:$0xff] %v92_v23  ;;  %v140_v35 = vxor.u32 2147483648, %v288_v32  ;;  %v292_v37 = vld [vmem:[%s520_s0 + $0xc8] sm:$0xff]  ;;  %v294_v38 = vld [vmem:[%s520_s0 + $0x50] sm:$0xff]  ;;  %v148_v39 = vxor.u32 2147483648, %v290_v36 }
   0xa   :  { %279 = vst [vmem:[%s521_s1 + $0x30] sm:$0xff] %v100_v27  ;;  %281 = vst [vmem:[%s521_s1 + $0xb0] sm:$0xff] %v108_v28  ;;  %v156_v40 = vxor.u32 2147483648, %v292_v37  ;;  %v164_v41 = vxor.u32 2147483648, %v294_v38  ;;  %v296_v42 = vld [vmem:[%s520_s0 + $0xd0] sm:$0xff]  ;;  %v298_v43 = vld [vmem:[%s520_s0 + $0x58] sm:$0xff] }
   0xb   :  { %283 = vst [vmem:[%s521_s1 + $0x38] sm:$0xff] %v116_v29  ;;  %v300_v44 = vld [vmem:[%s520_s0 + $0xd8] sm:$0xff]  ;;  %285 = vst [vmem:[%s521_s1 + $0xb8] sm:$0xff] %v124_v33  ;;  %v172_v45 = vxor.u32 2147483648, %v296_v42  ;;  %v180_v46 = vxor.u32 2147483648, %v298_v43  ;;  %v302_v48 = vld [vmem:[%s520_s0 + $0x60] sm:$0xff] }
   0xc   :  { %287 = vst [vmem:[%s521_s1 + $0x40] sm:$0xff] %v132_v34  ;;  %289 = vst [vmem:[%s521_s1 + $0xc0] sm:$0xff] %v140_v35  ;;  %v188_v47 = vxor.u32 2147483648, %v300_v44  ;;  %v304_v49 = vld [vmem:[%s520_s0 + $0xe0] sm:$0xff]  ;;  %v306_v50 = vld [vmem:[%s520_s0 + $0x68] sm:$0xff]  ;;  %v196_v51 = vxor.u32 2147483648, %v302_v48 }
   0xd   :  { %291 = vst [vmem:[%s521_s1 + $0x48] sm:$0xff] %v148_v39  ;;  %293 = vst [vmem:[%s521_s1 + $0xc8] sm:$0xff] %v156_v40  ;;  %v204_v52 = vxor.u32 2147483648, %v304_v49  ;;  %v212_v53 = vxor.u32 2147483648, %v306_v50  ;;  %v308_v54 = vld [vmem:[%s520_s0 + $0xe8] sm:$0xff]  ;;  %v310_v55 = vld [vmem:[%s520_s0 + $0x70] sm:$0xff] }
   0xe   :  { %295 = vst [vmem:[%s521_s1 + $0x50] sm:$0xff] %v164_v41  ;;  %v312_v56 = vld [vmem:[%s520_s0 + $0xf0] sm:$0xff]  ;;  %297 = vst [vmem:[%s521_s1 + $0xd0] sm:$0xff] %v172_v45  ;;  %v220_v57 = vxor.u32 2147483648, %v308_v54  ;;  %v228_v58 = vxor.u32 2147483648, %v310_v55  ;;  %v314_v60 = vld [vmem:[%s520_s0 + $0x78] sm:$0xff] }
   0xf   :  { %299 = vst [vmem:[%s521_s1 + $0x58] sm:$0xff] %v180_v46  ;;  %301 = vst [vmem:[%s521_s1 + $0xd8] sm:$0xff] %v188_v47  ;;  %v236_v59 = vxor.u32 2147483648, %v312_v56  ;;  %v316_v61 = vld [vmem:[%s520_s0 + $0xf8] sm:$0xff]  ;;  %v244_v62 = vxor.u32 2147483648, %v314_v60 }
  0x10   :  { %303 = vst [vmem:[%s521_s1 + $0x60] sm:$0xff] %v196_v51  ;;  %305 = vst [vmem:[%s521_s1 + $0xe0] sm:$0xff] %v204_v52  ;;  %v252_v63 = vxor.u32 2147483648, %v316_v61 }
  0x11   :  { %307 = vst [vmem:[%s521_s1 + $0x68] sm:$0xff] %v212_v53  ;;  %309 = vst [vmem:[%s521_s1 + $0xe8] sm:$0xff] %v220_v57 }
  0x12   :  { %311 = vst [vmem:[%s521_s1 + $0x70] sm:$0xff] %v228_v58  ;;  %313 = vst [vmem:[%s521_s1 + $0xf0] sm:$0xff] %v236_v59 }
  0x13   :  { %315 = vst [vmem:[%s521_s1 + $0x78] sm:$0xff] %v244_v62  ;;  %317 = vst [vmem:[%s521_s1 + $0xf8] sm:$0xff] %v252_v63 }

// kernel: point_st_correlation.1
= control target key start
LH: loop header
LB: loop body
LE: loop exit
PB: predicated region body
PF: predicated region fallthrough
CT: control target
= control target key end

     0   :  { %10 = vsyncpa [#allocation3], 0  ;;  %s1500_s0 = inlined_call_operand.vmem [shape: f32[2,8,7,128], index: 0, kind: input, shape index: {}]   ;;  %s1501_s1 = inlined_call_operand.vmem [shape: f32[2,7,128], index: 1, kind: input, shape index: {}]   ;;  %s1502_s2 = inlined_call_operand.vmem [shape: f32[4,7], index: 2, kind: input, shape index: {}]   ;;  %s1503_s3 = inlined_call_operand.vmem [shape: f32[4,7], index: 3, kind: input, shape index: {}]   ;;  %s1504_s4 = inlined_call_operand.vmem [shape: f32[4,1], index: 4, kind: input, shape index: {}]   ;;  %s1505_s5 = inlined_call_operand.hbm [shape: f32[2,4,128], index: 5, kind: output, shape index: {}]  }
   0x1   :  { %12 = vsyncpa [#allocation3 + $0x1], 0  ;;  %s1352_s18 = smov 0   ;;  %s1354_s19 = smov 0  }
   0x2   :  { %s1356_s20 = smov 0   ;;  %s1358_s21 = smov 0  }
   0x3   :  { %s1360_s22 = smov 0   ;;  %s1362_s23 = smov 0  }
   0x4 LB: > { %s1079_s24 = sadd.s32 4294967295, %s1316_s23   ;;  %s1080_s25 = sadd.s32 4294967294, %s1316_s23   ;;  %s1316_s23 = sphi %s1362_s23, %s18_s23   ;;  %s1312_s22 = sphi %s1360_s22, %s1512_s22   ;;  %s1308_s21 = sphi %s1358_s21, %s1511_s21   ;;  %s1304_s20 = sphi %s1356_s20, %s1510_s20   ;;  %s1300_s19 = sphi %s1354_s19, %s1509_s19   ;;  %s1296_s18 = sphi %s1352_s18, %s1508_s18  }
   0x5   : > { %s30_s26 = sadd.s32 1, %s1312_s22  ;;  %s158_s27 = sadd.s32 1, %s1304_s20 }
   0x6   : > { %p32_p0 = scmp.ge.s32.totalorder %s30_s26, 2  ;;  %p168_p1 = scmp.ne.s32.totalorder %s1304_s20, %s1300_s19 }
   0x7   : > { %p169_p2 = scmp.eq.s32.totalorder %s1079_s24, 1  ;;  %p174_p3 = scmp.ne.s32.totalorder %s1300_s19, %s1296_s18 }
   0x8   : > { %s1514_s26 = smov (%p32_p0, %s30_s26), 0  ;;  %p175_p5 = scmp.eq.s32.totalorder %s1080_s25, 1 }
   0x9   : > { %p1392_p4 = por %p169_p2, %p168_p1  ;;  %s153_s29 = ssub.s32 %s1312_s22, %s1514_s26 }
   0xa   : > { %p1083_p6 = scmp.ge.s32.totalorder %s1316_s23, 1  ;;  %p156_p7 = scmp.eq.s32.totalorder %s153_s29, 0 }
   0xb   : > { %p1399_p8 = por %p175_p5, %p174_p3  ;;  %p223_p9 = scmp.lt.s32.totalorder %s1316_s23, 3 }
   0xc   : > { %s1405_s6 = scalar_select %p156_p7, %s1304_s20, %s158_s27  }
   0xd   : > { %p224_p10 = pnand %p1083_p6, %p223_p9 }
   0xe   : > { %p261_p11 = scmp.lt.s32.totalorder (!%p224_p10), %s1308_s21, 1  ;;  %s258_s7 = sand.u32 (!%p224_p10), 1, %s1300_s19  }
   0xf   : > { %227 = sbr.rel (%p224_p10) target bundleno = 254 (0xfe), region = 40  ;;  %s1084_s8 = sshll.u32 (!%p224_p10), %s258_s7, 2 }
  0x10   : > { %s976_s15 = scalar_lea.sflag (!%p224_p10), [#allocation3], %s258_s7 }
  0x14   : > { %v1318_v0 = vmov 0.0   ;;  %vm1319_vm0 = vmmov 0   ;;  %v279_v1 = vld [vmem:[%s1504_s4] sm:$0xf]  ;;  %s262_s9 = scalar_select %p261_p11, %s1308_s21, 1  ;;  %v1320_v2 = vmov 0  }
  0x15   : > { %1136 = vmatprep.subr.mxu0 %v1318_v0  ;;  %1138 = vmatprep.mubr.msk.f32.mxu0 %vm1319_vm0, %v1318_v0  ;;  %vm289_vm1 = vcmask 1046528   ;;  %v277_v3 = vld [vmem:[%s1503_s3] sm:$0xf]  ;;  %vm285_vm2 = vcmask 56320  }
  0x16   : > { %1141 = vmatprep.subr.mxu1 %v1318_v0  ;;  %1143 = vmatprep.mubr.msk.f32.mxu1 %vm1319_vm0, %v1318_v0  ;;  %s1117_s10 = sshll.u32 %s262_s9, 6  ;;  %s1087_s11 = sshll.u32 %s262_s9, 3  ;;  %v276_v4 = vld [vmem:[%s1502_s2] sm:$0xf] }
  0x17   : > { %1239 = vset.pattern.permute.xlu0 %v1320_v2  ;;  %s1417_s14 = scalar_lea.vmem %s1500_s0, %s1117_s10  ;;  %s275_s17 = scalar_lea.vmem %s1501_s1, %s1087_s11 }
  0x18   : > { %282 = vperm.xlu0 %1239, %v279_v1   ;;  %v278_v5 = vld [vmem:[%s275_s17] sm:$0x7f]  ;;  %v1092_v7 = vld [vmem:[%s1417_s14 + $0x8] sm:$0x7f]  ;;  %v1095_v8 = vld [vmem:[%s1417_s14 + $0x10] sm:$0x7f] }
  0x19   : > { %v363_v6 = vld [vmem:[%s1417_s14] sm:$0x7f]  ;;  %1137 = vmatpush3.msk.msra.mxu0 %vm289_vm1, %v278_v5  ;;  %v1098_v9 = vld [vmem:[%s1417_s14 + $0x18] sm:$0x7f]  ;;  %v1104_v11 = vld [vmem:[%s1417_s14 + $0x28] sm:$0x7f] }
  0x1a   : > { %1142 = vmatpush3.msk.msra.mxu1 %vm289_vm1, %v363_v6  ;;  %1139 = vmatmul.mubr.msk.f32.vlgmr.msra.gmra.mxu0 %vm285_vm2, %v277_v3  ;;  %v1101_v10 = vld [vmem:[%s1417_s14 + $0x20] sm:$0x7f]  ;;  %v1107_v12 = vld [vmem:[%s1417_s14 + $0x30] sm:$0x7f]  ;;  %v1110_v13 = vld [vmem:[%s1417_s14 + $0x38] sm:$0x7f] }
  0x1b   : > { %1146 = vmatprep.subr.mxu0 %v1318_v0  ;;  %1144 = vmatmul.mubr.msk.f32.vlgmr.msra.gmra.mxu1 %vm285_vm2, %v276_v4  ;;  %s1114_s9 = sshll.u32 %s1308_s21, 6  ;;  %s260_s10 = scalar_lea.vmem [#allocation2], %s1084_s8 }
  0x1c   : > { %1147 = vmatpush3.msk.msra.mxu0 %vm289_vm1, %v1092_v7  ;;  %1151 = vmatprep.subr.mxu1 %v1318_v0  ;;  %s990_s11 = sshll.u32 %s260_s10, 4  ;;  %s988_s14 = scalar_lea.hbm %s1505_s5, %s1114_s9  ;;  %s991_s11 = int_to_ptr.vmem [resolvable:$true] %s990_s11 }
  0x1d   : > { %1148 = vmatprep.mubr.msk.f32.mxu0 %vm1319_vm0, %v1318_v0  ;;  %1152 = vmatpush3.msk.msra.mxu1 %vm289_vm1, %v1095_v8  ;;  %s1240_s16 = scalar_lea.vmem %s991_s11, 64  ;;  %s1321_s17 = smov [#allocation2]  }
  0x1e   : > { %1153 = vmatprep.mubr.msk.f32.mxu1 %vm1319_vm0, %v1318_v0  ;;  %1149 = vmatmul.mubr.msk.f32.vlgmr.msra.gmra.mxu0 %vm285_vm2, %v276_v4  ;;  %p1241_p12 = scmp.ne.s32.totalorder %s991_s11, %s1240_s16  ;;  %s1244_s24 = sshll.u32 %s1321_s17, 4  ;;  %s1245_s24 = int_to_ptr.vmem [resolvable:$false] %s1244_s24 }
  0x1f   : > { %1156 = vmatprep.subr.mxu0 %v1318_v0  ;;  %1154 = vmatmul.mubr.msk.f32.vlgmr.msra.gmra.mxu1 %vm285_vm2, %v276_v4  ;;  %s1246_s21 = scalar_lea.vmem %s1245_s24, 128  ;;  %p1247_p1 = scmp.lt.s32.totalorder %s991_s11, %s1245_s24 }
  0x20   : > { %1157 = vmatpush3.msk.msra.mxu0 %vm289_vm1, %v1098_v9  ;;  %1161 = vmatprep.subr.mxu1 %v1318_v0  ;;  %p1242_p13 = pnand %p1241_p12, %p1392_p4  ;;  %p1248_p2 = scmp.lt.s32.totalorder %s1246_s21, %s1240_s16 }
  0x21   : > { %1158 = vmatprep.mubr.msk.f32.mxu0 %vm1319_vm0, %v1318_v0  ;;  %1162 = vmatpush3.msk.msra.mxu1 %vm289_vm1, %v1101_v10 }
  0x22   : > { %1163 = vmatprep.mubr.msk.f32.mxu1 %vm1319_vm0, %v1318_v0  ;;  %1159 = vmatmul.mubr.msk.f32.vlgmr.msra.gmra.mxu0 %vm285_vm2, %v276_v4  ;;  %p1243_p0 = pneg %p1242_p13  ;;  %p1249_p3 = por %p1248_p2, %p1247_p1 }
  0x23   : > { %1166 = vmatprep.subr.mxu0 %v1318_v0  ;;  %1164 = vmatmul.mubr.msk.f32.vlgmr.msra.gmra.mxu1 %vm285_vm2, %v276_v4 }
  0x24   : > { %1167 = vmatpush3.msk.msra.mxu0 %vm289_vm1, %v1104_v11  ;;  %1171 = vmatprep.subr.mxu1 %v1318_v0  ;;  %p1250_p5 = pnand %p1249_p3, %p1243_p0 }
  0x25   : > { %1168 = vmatprep.mubr.msk.f32.mxu0 %vm1319_vm0, %v1318_v0  ;;  %1172 = vmatpush3.msk.msra.mxu1 %vm289_vm1, %v1107_v12 }
  0x26   : > { %1173 = vmatprep.mubr.msk.f32.mxu1 %vm1319_vm0, %v1318_v0  ;;  %1169 = vmatmul.mubr.msk.f32.vlgmr.msra.gmra.mxu0 %vm285_vm2, %v276_v4 }
  0x27   : > { %1176 = vmatprep.subr.mxu0 %v1318_v0  ;;  %1174 = vmatmul.mubr.msk.f32.vlgmr.msra.gmra.mxu1 %vm285_vm2, %v276_v4 }
  0x28   : > { %1177 = vmatpush3.msk.msra.mxu0 %vm289_vm1, %v1110_v13  ;;  %1178 = vmatprep.mubr.msk.f32.mxu0 %vm1319_vm0, %v1318_v0 }
  0x2a   : > { %1179 = vmatmul.mubr.msk.f32.vlgmr.msra.gmra.mxu0 %vm285_vm2, %v276_v4 }
  0x93   : > { %v283_v33 = vpop.permute.xlu0 %282 }
  0xda   : > { %v359_v14 = vpop.f32.mrf.mxu0 }
  0xdb   : > { %v436_v15 = vpop.f32.mrf.mxu1  ;;  %v360_v38 = vadd.f32 %v359_v14, %v283_v33 }
  0xdc   : > { %v1140_v16 = vpop.f32.mrf.mxu0 }
  0xdd   : > { %v1145_v17 = vpop.f32.mrf.mxu1 }
  0xde   : > { %v511_v18 = vpop.f32.mrf.mxu0 }
  0xdf   : > { %v515_v19 = vmax.f32 %v436_v15, %v511_v18  ;;  %v587_v20 = vpop.f32.mrf.mxu1 }
  0xe0   : > { %v1150_v21 = vpop.f32.mrf.mxu0 }
  0xe1   : > { %v591_v22 = vmax.f32 %v515_v19, %v587_v20  ;;  %v1155_v23 = vpop.f32.mrf.mxu1 }
  0xe2   : > { %v663_v24 = vpop.f32.mrf.mxu0 }
  0xe3   : > { %v667_v25 = vmax.f32 %v591_v22, %v663_v24  ;;  %v739_v26 = vpop.f32.mrf.mxu1 }
  0xe4   : > { %v1160_v27 = vpop.f32.mrf.mxu0 }
  0xe5   : > { %v743_v28 = vmax.f32 %v667_v25, %v739_v26  ;;  %v1165_v29 = vpop.f32.mrf.mxu1 }
  0xe6   : > { %v815_v30 = vpop.f32.mrf.mxu0 }
  0xe7   : > { %v819_v31 = vmax.f32 %v743_v28, %v815_v30  ;;  %v891_v32 = vpop.f32.mrf.mxu1 }
  0xe8   : > { %v1170_v34 = vpop.f32.mrf.mxu0 }
  0xe9   : > { %v895_v35 = vmax.f32 %v819_v31, %v891_v32  ;;  %v1175_v36 = vpop.f32.mrf.mxu1 }
  0xea   : > { %v967_v37 = vpop.f32.mrf.mxu0 }
  0xeb   : > { %v971_v39 = vmax.f32 %v895_v35, %v967_v37 }
  0xec   : > { %v1180_v40 = vpop.f32.mrf.mxu0 }
  0xed   : > { %v972_v41 = vadd.f32 %v971_v39, %v360_v38 }
  0xef   : > { %v973_v42 = vmax.f32 %v972_v41, 0.0 }
  0xf1   : > { %974 = vst [vmem:[%s260_s10] sm:$0xf] %v973_v42 }
  0xf2   : > { %1253 = shalt.err (!%p1250_p5)
}
  0xf3   : > { %s1254_s25 = scalar_lea.hbm %s988_s14, 64  ;;  %s1258_s7 = scalar_lea.hbm %s1505_s5, 128 }
  0xf4   : > { %p1255_p6 = scmp.ne.s32.totalorder %s988_s14, %s1254_s25  ;;  %p1259_p10 = scmp.lt.s32.totalorder %s988_s14, %s1505_s5 }
  0xf5   : > { %p1260_p11 = scmp.lt.s32.totalorder %s1258_s7, %s1254_s25 }
  0xf6   : > { %p1256_p7 = pnand %p1255_p6, %p1392_p4 }
  0xf7   : > { %p1261_p12 = por %p1260_p11, %p1259_p10 }
  0xf8   : > { %p1257_p9 = pneg %p1256_p7 }
  0xfa   : > { %p1262_p13 = pnand %p1261_p12, %p1257_p9 }
  0xfc   : > { %1265 = shalt.err (!%p1262_p13)
}
  0xfd   : > { %1181 = dma.vmem_to_hbm [thread:$0]  (%p1392_p4), %s991_s11, 64, %s988_s14, %s976_s15  }
  0xfe PF: > { %p1187_p0 = scmp.ge.s32.totalorder %s1316_s23, 2  ;;  %s1002_s10 = sand.u32 1, %s1296_s18  }
  0xff   : > { %s1003_s12 = scalar_lea.sflag [#allocation3], %s1002_s10 }
 0x100   : > { %p1184_p1 = pnand %p1187_p0, %p1399_p8 }
 0x102   : > { %p1185_p2 = pneg %p1184_p1 }
 0x104   : > { %1291 = dma.done.wait (%p1185_p2), %s1003_s12, 64  }
 0x105   : > { %1293 = vsyncadd (%p1185_p2), %s1003_s12, 4294967232  ;;  %s18_s23 = sadd.s32 1, %s1316_s23   ;;  %s1508_s18 = smov %s1300_s19 }
 0x106   : > { %p15_p3 = scmp.ge.s32.totalorder %s18_s23, 4   ;;  %s1509_s19 = smov %s1304_s20 }
 0x107   : > { %s1510_s20 = smov %s1405_s6  ;;  %s1511_s21 = smov %s1312_s22 }
 0x108   : > { %s1512_s22 = smov %s1514_s26  ;;  %17 = sbr.rel (!%p15_p3) target bundleno = 4 (0x4), region = 85 }
 0x10d   :  { %1008 = vsyncpa [#allocation3], 1 }
 0x10e   :  { %1010 = vsyncpa [#allocation3 + $0x1], 1 }

</bundles_post_ra>
